<compile_context>
chip_gen: v7x
topology: tpu7x:2x2x1
jax: 0.10.0
libtpu: 0.0.40
codegen_flags: <defaults>
</compile_context>

<pallas_src>
import functools
import math

import jax
import jax.numpy as jnp
from jax.experimental import pallas as pl
from jax.experimental.pallas import tpu as pltpu


def _round_up(n, m):
    return ((n + m - 1) // m) * m


def gumbel_softmax_kernel(x_ref, u_ref, o_ref, *, inv_tau, hard):
    x = x_ref[...].astype(jnp.float32)

    # Uniform in [0,1) from the wrapper; clamp away 0 so log() is finite.
    u = jnp.maximum(u_ref[...], jnp.float32(2.0 ** -24))
    # Logistic(0,1) noise == g0 - g1 for iid Gumbel(0,1) g0, g1.
    n = jnp.log(u) - jnp.log(jnp.float32(1.0) - u)

    z = jnp.float32(2.0) * x + n

    if hard:
        # y_soft > 0.5  <=>  z / tau > 0  <=>  z > 0   (tau > 0)
        # TODO(synk): straight-through gradient (y_hard - sg(y_soft) + y_soft) is an
        # autograd construct; forward value is exactly y_hard, which is what we emit.
        out = jnp.where(z > jnp.float32(0.0), jnp.float32(1.0), jnp.float32(0.0))
    else:
        out = jax.nn.sigmoid(z * jnp.float32(inv_tau))

    o_ref[...] = out.astype(o_ref.dtype)


def gumbel_softmax(logits, key, *, tau=1.0, hard=True, lane_cols=1024, block_rows=256):
    """Pallas implementation of GumbelSoftmax.forward (forward values only)."""
    orig_shape = logits.shape
    out_dtype = logits.dtype
    n_elems = math.prod(orig_shape) if len(orig_shape) > 0 else 1

    # Lane-dense slab: (rows_padded, lane_cols), lane_cols a multiple of 128.
    cols = int(lane_cols)
    rows = max(1, -(-n_elems // cols))                 # ceil div
    tb = min(int(block_rows), _round_up(rows, 8))      # row tile, multiple of 8
    rows_p = _round_up(rows, tb)                       # rows divisible by the tile
    n_pad = rows_p * cols

    x_flat = logits.reshape(-1)
    if n_pad != n_elems:
        x_flat = jnp.pad(x_flat, (0, n_pad - n_elems))
    x2d = x_flat.reshape(rows_p, cols)                 # keep input dtype; cast in-kernel

    # One uniform draw per element (Logistic-noise identity).
    u2d = jax.random.uniform(key, (rows_p, cols), dtype=jnp.float32)

    kernel = functools.partial(
        gumbel_softmax_kernel, inv_tau=1.0 / float(tau), hard=bool(hard)
    )

    out2d = pl.pallas_call(
        kernel,
        out_shape=jax.ShapeDtypeStruct((rows_p, cols), out_dtype),
        grid=(rows_p // tb,),
        in_specs=[
            pl.BlockSpec((tb, cols), lambda i: (i, 0)),
            pl.BlockSpec((tb, cols), lambda i: (i, 0)),
        ],
        out_specs=pl.BlockSpec((tb, cols), lambda i: (i, 0)),
        # Tiles are fully independent -> shard across TensorCores on v7x.
        compiler_params=pltpu.CompilerParams(dimension_semantics=("parallel",)),
    )(x2d, u2d)

    out_flat = out2d.reshape(-1)
    if n_pad != n_elems:
        out_flat = out_flat[:n_elems]
    return out_flat.reshape(orig_shape)


if __name__ == "__main__":
    key = jax.random.PRNGKey(0)
    k_logits, k_noise0, k_noise1, k_noise2 = jax.random.split(key, 4)

    # Small logits consistent with ParaLIF usage: (batch, steps, neurons)
    logits = jax.random.normal(k_logits, (2, 8, 256), dtype=jnp.float32) * 2.0

    # Hard (spiking) path.
    spikes = gumbel_softmax(logits, k_noise0, tau=1.0, hard=True)
    spikes = jax.block_until_ready(spikes)
    assert spikes.shape == logits.shape
    assert spikes.dtype == logits.dtype
    assert bool(jnp.all((spikes == 0.0) | (spikes == 1.0)))
    rate = float(jnp.mean(spikes))
    assert 0.0 < rate < 1.0

    # Soft path.
    soft = gumbel_softmax(logits, k_noise1, tau=0.5, hard=False)
    soft = jax.block_until_ready(soft)
    assert soft.shape == logits.shape
    assert bool(jnp.all((soft >= 0.0) & (soft <= 1.0)))

    # Ragged / small shape exercises the pad-and-slice path.
    small = jax.random.normal(k_noise2, (3, 5, 7), dtype=jnp.float32)
    small_out = gumbel_softmax(small, k_noise2, tau=1.0, hard=True)
    small_out = jax.block_until_ready(small_out)
    assert small_out.shape == small.shape
    assert bool(jnp.all((small_out == 0.0) | (small_out == 1.0)))

    print("KERNEL_OK")
</pallas_src>

<mosaic_0001>
module attributes {stable_mosaic.version = 11 : i64} {
  func.func @gumbel_softmax_kernel(%arg0: i32, %arg1: memref<8x1024xf32, #tpu.memory_space<vmem>>, %arg2: memref<8x1024xf32, #tpu.memory_space<vmem>>, %arg3: memref<8x1024xf32, #tpu.memory_space<vmem>>) attributes {dimension_semantics = [#tpu.dimension_semantics<parallel>], iteration_bounds = array<i64: 1>, scalar_prefetch = 0 : i64, scratch_operands = 0 : i64, tpu.core_type = #tpu.core_type<tc>, window_params = [{transform_indices = @transform_0, window_bounds = array<i64: 8, 1024>}, {transform_indices = @transform_1, window_bounds = array<i64: 8, 1024>}, {transform_indices = @transform_2, window_bounds = array<i64: 8, 1024>}]} {
    %c0 = arith.constant 0 : index
    %c0_0 = arith.constant 0 : index
    %0 = vector.load %arg1[%c0, %c0_0] : memref<8x1024xf32, #tpu.memory_space<vmem>>, vector<8x1024xf32>
    %c0_1 = arith.constant 0 : index
    %c0_2 = arith.constant 0 : index
    %1 = vector.load %arg2[%c0_1, %c0_2] : memref<8x1024xf32, #tpu.memory_space<vmem>>, vector<8x1024xf32>
    %cst = arith.constant 5.96046448E-8 : f32
    %2 = vector.broadcast %cst : f32 to vector<8x1024xf32>
    %3 = arith.maximumf %1, %2 : vector<8x1024xf32>
    %4 = math.log %3 : vector<8x1024xf32>
    %cst_3 = arith.constant 1.000000e+00 : f32
    %5 = vector.broadcast %cst_3 : f32 to vector<8x1024xf32>
    %6 = arith.subf %5, %3 : vector<8x1024xf32>
    %7 = math.log %6 : vector<8x1024xf32>
    %8 = arith.subf %4, %7 : vector<8x1024xf32>
    %cst_4 = arith.constant 2.000000e+00 : f32
    %9 = vector.broadcast %cst_4 : f32 to vector<8x1024xf32>
    %10 = arith.mulf %9, %0 : vector<8x1024xf32>
    %11 = arith.addf %10, %8 : vector<8x1024xf32>
    %cst_5 = arith.constant 0.000000e+00 : f32
    %12 = vector.broadcast %cst_5 : f32 to vector<8x1024xf32>
    %13 = arith.cmpf ogt, %11, %12 : vector<8x1024xf32>
    %cst_6 = arith.constant 1.000000e+00 : f32
    %cst_7 = arith.constant 0.000000e+00 : f32
    %14 = vector.broadcast %cst_6 : f32 to vector<8x1024xf32>
    %15 = vector.broadcast %cst_7 : f32 to vector<8x1024xf32>
    %16 = arith.select %13, %14, %15 : vector<8x1024xi1>, vector<8x1024xf32>
    %c0_8 = arith.constant 0 : index
    %c0_9 = arith.constant 0 : index
    %17 = vector.load %arg3[%c0_8, %c0_9] : memref<8x1024xf32, #tpu.memory_space<vmem>>, vector<8x1024xf32>
    tpu.vector_store %arg3[%c0_8, %c0_9], %16 {strides = array<i32>} : memref<8x1024xf32, #tpu.memory_space<vmem>>, vector<8x1024xf32>,
    return
  }
  func.func @transform_0(%arg0: i32) -> (i32, i32) {
    %c0_i32 = arith.constant 0 : i32
    %c0_i32_0 = arith.constant 0 : i32
    return %arg0, %c0_i32 : i32, i32
  }
  func.func @transform_1(%arg0: i32) -> (i32, i32) {
    %c0_i32 = arith.constant 0 : i32
    %c0_i32_0 = arith.constant 0 : i32
    return %arg0, %c0_i32 : i32, i32
  }
  func.func @transform_2(%arg0: i32) -> (i32, i32) {
    %c0_i32 = arith.constant 0 : i32
    %c0_i32_0 = arith.constant 0 : i32
    return %arg0, %c0_i32 : i32, i32
  }
}

</mosaic_0001>

<bundles_post_ra>
// kernel: tpu_custom_call.1
= control target key start
LH: loop header
LB: loop body
LE: loop exit
PB: predicated region body
PF: predicated region fallthrough
CT: control target
= control target key end

     0   :  { %7 = vsyncpa [#allocation3], 0  ;;  %s327_s0 = inlined_call_operand.hbm [shape: f32[8,1024], index: 0, kind: input, shape index: {}]   ;;  %s328_s1 = inlined_call_operand.hbm [shape: f32[8,1024], index: 1, kind: input, shape index: {}]   ;;  %s329_s2 = inlined_call_operand.hbm [shape: f32[8,1024], index: 2, kind: output, shape index: {}]  }
   0x1   :  { %8 = vsyncpa [#allocation6], 0 }
   0x2   :  { %9 = vsyncpa [#allocation4], 0  ;;  %s272_s9 = smov [#allocation2]   ;;  %s273_s11 = smov [#allocation5]  }
   0x3   :  { %s16_s10 = sshll.u32 %s272_s9, 4  ;;  %s26_s12 = sshll.u32 %s273_s11, 4  ;;  %s17_s10 = int_to_ptr.vmem [resolvable:$true] %s16_s10  ;;  %s27_s12 = int_to_ptr.vmem [resolvable:$true] %s26_s12 }
   0x4   :  { %s200_s15 = scalar_lea.hbm %s327_s0, 1024 }
   0x5   :  { %p201_p0 = scmp.ne.s32.totalorder %s327_s0, %s200_s15  ;;  %p204_p1 = scmp.lt.u32.totalorder %s200_s15, %s327_s0 }
   0x7   :  { %p206_p2 = pnand %p204_p1, %p201_p0 }
   0x9   :  { %209 = shalt.err (!%p206_p2)
}
   0xa   :  { %s210_s20 = scalar_lea.vmem %s17_s10, 1024  ;;  %p215_p4 = scmp.lt.s32.totalorder %s17_s10, %s17_s10 }
   0xb   :  { %p211_p3 = scmp.ne.s32.totalorder %s17_s10, %s210_s20  ;;  %p216_p5 = scmp.lt.s32.totalorder %s210_s20, %s210_s20 }
   0xd   :  { %p217_p6 = por %p216_p5, %p215_p4 }
   0xf   :  { %p218_p7 = pnand %p217_p6, %p211_p3 }
  0x11   :  { %221 = shalt.err (!%p218_p7)
}
  0x12   :  { %19 = dma.hbm_to_vmem [thread:$0]  %s327_s0, 1024, %s17_s10, [#allocation3]  }
  0x13   :  { %s222_s25 = scalar_lea.hbm %s328_s1, 1024 }
  0x14   :  { %p223_p8 = scmp.ne.s32.totalorder %s328_s1, %s222_s25  ;;  %p226_p9 = scmp.lt.u32.totalorder %s222_s25, %s328_s1 }
  0x16   :  { %p228_p10 = pnand %p226_p9, %p223_p8 }
  0x18   :  { %231 = shalt.err (!%p228_p10)
}
  0x19   :  { %s232_s30 = scalar_lea.vmem %s27_s12, 1024  ;;  %p237_p12 = scmp.lt.s32.totalorder %s27_s12, %s27_s12 }
  0x1a   :  { %p233_p11 = scmp.ne.s32.totalorder %s27_s12, %s232_s30  ;;  %p238_p13 = scmp.lt.s32.totalorder %s232_s30, %s232_s30 }
  0x1c   :  { %p239_p0 = por %p238_p13, %p237_p12 }
  0x1e   :  { %p240_p1 = pnand %p239_p0, %p233_p11 }
  0x20   :  { %243 = shalt.err (!%p240_p1)
}
  0x21   :  { %29 = dma.hbm_to_vmem [thread:$0]  %s328_s1, 1024, %s27_s12, [#allocation6]  }
  0x22   :  { %266 = dma.done.wait [#allocation3], 1024  }
  0x23   :  { %267 = vsyncadd [#allocation3], 4294966272 }
  0x24   :  { %268 = dma.done.wait [#allocation6], 1024  }
  0x25   :  { %269 = vsyncadd [#allocation6], 4294966272  ;;  %v44_v0 = vld [vmem:[#allocation5] sm:$0xff]  ;;  %v45_v2 = vld [vmem:[#allocation5 + $0x8] sm:$0xff]  ;;  %v274_v59 = vmov 0.0   ;;  %s275_s1 = smov [#allocation7]  }
  0x26   :  { %v52_v1 = vmax.f32 %v44_v0, 5.9604645e-08  ;;  %v46_v3 = vld [vmem:[#allocation5 + $0x10] sm:$0xff]  ;;  %v53_v4 = vmax.f32 %v45_v2, 5.9604645e-08  ;;  %v47_v6 = vld [vmem:[#allocation5 + $0x18] sm:$0xff]  ;;  %v48_v9 = vld [vmem:[#allocation5 + $0x20] sm:$0xff]  ;;  %s154_s4 = sshll.u32 %s275_s1, 4  ;;  %s155_s4 = int_to_ptr.vmem [resolvable:$true] %s154_s4 }
  0x27   :  { %v54_v5 = vmax.f32 %v46_v3, 5.9604645e-08  ;;  %v55_v8 = vmax.f32 %v47_v6, 5.9604645e-08  ;;  %v49_v10 = vld [vmem:[#allocation5 + $0x28] sm:$0xff]  ;;  %v56_v13 = vmax.f32 %v48_v9, 5.9604645e-08  ;;  %v50_v14 = vld [vmem:[#allocation5 + $0x30] sm:$0xff]  ;;  %v51_v17 = vld [vmem:[#allocation5 + $0x38] sm:$0xff]  ;;  %p249_p3 = scmp.lt.s32.totalorder %s155_s4, %s155_s4 }
  0x28   :  { %168 = vlog2.f32 %v52_v1  ;;  %v76_v7 = vsub.f32 1.0, %v52_v1  ;;  %v77_v11 = vsub.f32 1.0, %v53_v4  ;;  %v57_v16 = vmax.f32 %v49_v10, 5.9604645e-08  ;;  %v36_v24 = vld [vmem:[#allocation2] sm:$0xff]  ;;  %v37_v27 = vld [vmem:[#allocation2 + $0x8] sm:$0xff]  ;;  %v38_v34 = vld [vmem:[#allocation2 + $0x10] sm:$0xff] }
  0x29   :  { %170 = vlog2.f32 %v53_v4  ;;  %v78_v12 = vsub.f32 1.0, %v54_v5  ;;  %v79_v15 = vsub.f32 1.0, %v55_v8  ;;  %v80_v18 = vsub.f32 1.0, %v56_v13  ;;  %v39_v41 = vld [vmem:[#allocation2 + $0x18] sm:$0xff]  ;;  %v40_v54 = vld [vmem:[#allocation2 + $0x20] sm:$0xff]  ;;  %v41_v57 = vld [vmem:[#allocation2 + $0x28] sm:$0xff] }
  0x2a   :  { %172 = vlog2.f32 %v76_v7  ;;  %v58_v19 = vmax.f32 %v50_v14, 5.9604645e-08  ;;  %v81_v20 = vsub.f32 1.0, %v57_v16  ;;  %v59_v21 = vmax.f32 %v51_v17, 5.9604645e-08  ;;  %v42_v63 = vld [vmem:[#allocation2 + $0x30] sm:$0xff]  ;;  %s244_s5 = scalar_lea.vmem %s155_s4, 1024 }
  0x2b   :  { %174 = vlog2.f32 %v77_v11  ;;  %v108_v33 = vmul.f32 2.0, %v36_v24  ;;  %v109_v37 = vmul.f32 2.0, %v37_v27  ;;  %v110_v45 = vmul.f32 2.0, %v38_v34  ;;  %p245_p2 = scmp.ne.s32.totalorder %s155_s4, %s244_s5  ;;  %p250_p4 = scmp.lt.s32.totalorder %s244_s5, %s244_s5 }
  0x2c   :  { %176 = vlog2.f32 %v54_v5  ;;  %v82_v22 = vsub.f32 1.0, %v58_v19  ;;  %v83_v28 = vsub.f32 1.0, %v59_v21  ;;  %v111_v53 = vmul.f32 2.0, %v39_v41 }
  0x2d   :  { %178 = vlog2.f32 %v78_v12  ;;  %v112_v3 = vmul.f32 2.0, %v40_v54  ;;  %v114_v17 = vmul.f32 2.0, %v42_v63  ;;  %p251_p5 = por %p250_p4, %p249_p3 }
  0x2e   :  { %180 = vlog2.f32 %v55_v8  ;;  %v113_v8 = vmul.f32 2.0, %v41_v57 }
  0x2f   :  { %182 = vlog2.f32 %v79_v15  ;;  %p252_p6 = pnand %p251_p5, %p245_p2 }
  0x30   :  { %184 = vlog2.f32 %v56_v13  ;;  %v43_v13 = vld [vmem:[#allocation2 + $0x38] sm:$0xff] }
  0x31   :  { %186 = vlog2.f32 %v80_v18 }
  0x32   :  { %v169_v23 = vpop.eup %168  ;;  %188 = vlog2.f32 %v57_v16 }
  0x33   :  { %v171_v25 = vpop.eup %170  ;;  %v61_v26 = vmul.f32 0.6931472, %v169_v23  ;;  %190 = vlog2.f32 %v81_v20 }
  0x34   :  { %v173_v29 = vpop.eup %172  ;;  %v63_v30 = vmul.f32 0.6931472, %v171_v25  ;;  %192 = vlog2.f32 %v58_v19  ;;  %v115_v25 = vmul.f32 2.0, %v43_v13 }
  0x35   :  { %v175_v31 = vpop.eup %174  ;;  %v85_v32 = vmul.f32 0.6931472, %v173_v29  ;;  %194 = vlog2.f32 %v82_v22 }
  0x36   :  { %v177_v35 = vpop.eup %176  ;;  %v87_v36 = vmul.f32 0.6931472, %v175_v31  ;;  %196 = vlog2.f32 %v59_v21 }
  0x37   :  { %v179_v38 = vpop.eup %178  ;;  %v100_v39 = vsub.f32 %v61_v26, %v85_v32  ;;  %v65_v40 = vmul.f32 0.6931472, %v177_v35  ;;  %198 = vlog2.f32 %v83_v28 }
  0x38   :  { %v181_v42 = vpop.eup %180  ;;  %v101_v43 = vsub.f32 %v63_v30, %v87_v36  ;;  %v89_v44 = vmul.f32 0.6931472, %v179_v38 }
  0x39   :  { %v183_v46 = vpop.eup %182  ;;  %v116_v47 = vadd.f32 %v108_v33, %v100_v39  ;;  %v67_v48 = vmul.f32 0.6931472, %v181_v42 }
  0x3a   :  { %v185_v49 = vpop.eup %184  ;;  %v117_v50 = vadd.f32 %v109_v37, %v101_v43  ;;  %v102_v51 = vsub.f32 %v65_v40, %v89_v44  ;;  %v91_v52 = vmul.f32 0.6931472, %v183_v46 }
  0x3b   :  { %v187_v55 = vpop.eup %186  ;;  %vm124_vm0 = vcmp.gt.f32.partialorder %v116_v47, 0.0  ;;  %v69_v56 = vmul.f32 0.6931472, %v185_v49 }
  0x3c   :  { %v189_v58 = vpop.eup %188  ;;  %v132_v60 = vsel %vm124_vm0, 1.0, %v274_v59  ;;  %vm125_vm1 = vcmp.gt.f32.partialorder %v117_v50, 0.0  ;;  %v118_v61 = vadd.f32 %v110_v45, %v102_v51  ;;  %v103_v62 = vsub.f32 %v67_v48, %v91_v52 }
  0x3d   :  { %v191_v0 = vpop.eup %190  ;;  %140 = vst [vmem:[#allocation7] sm:$0xff] %v132_v60  ;;  %v133_v1 = vsel %vm125_vm1, 1.0, %v274_v59  ;;  %v93_v2 = vmul.f32 0.6931472, %v187_v55  ;;  %v71_v4 = vmul.f32 0.6931472, %v189_v58 }
  0x3e   :  { %v193_v5 = vpop.eup %192  ;;  %141 = vst [vmem:[#allocation7 + $0x8] sm:$0xff] %v133_v1  ;;  %vm126_vm2 = vcmp.gt.f32.partialorder %v118_v61, 0.0  ;;  %v119_v6 = vadd.f32 %v111_v53, %v103_v62  ;;  %v95_v7 = vmul.f32 0.6931472, %v191_v0 }
  0x3f   :  { %v195_v9 = vpop.eup %194  ;;  %v134_v10 = vsel %vm126_vm2, 1.0, %v274_v59  ;;  %v104_v11 = vsub.f32 %v69_v56, %v93_v2  ;;  %v73_v12 = vmul.f32 0.6931472, %v193_v5 }
  0x40   :  { %v197_v14 = vpop.eup %196  ;;  %142 = vst [vmem:[#allocation7 + $0x10] sm:$0xff] %v134_v10  ;;  %vm127_vm3 = vcmp.gt.f32.partialorder %v119_v6, 0.0  ;;  %v105_v15 = vsub.f32 %v71_v4, %v95_v7  ;;  %v97_v16 = vmul.f32 0.6931472, %v195_v9 }
  0x41   :  { %v199_v18 = vpop.eup %198  ;;  %v135_v19 = vsel %vm127_vm3, 1.0, %v274_v59  ;;  %v120_v20 = vadd.f32 %v112_v3, %v104_v11  ;;  %v75_v21 = vmul.f32 0.6931472, %v197_v14 }
  0x42   :  { %143 = vst [vmem:[#allocation7 + $0x18] sm:$0xff] %v135_v19  ;;  %v121_v22 = vadd.f32 %v113_v8, %v105_v15  ;;  %v106_v23 = vsub.f32 %v73_v12, %v97_v16  ;;  %v99_v24 = vmul.f32 0.6931472, %v199_v18 }
  0x43   :  { %vm128_vm4 = vcmp.gt.f32.partialorder %v120_v20, 0.0 }
  0x44   :  { %v136_v26 = vsel %vm128_vm4, 1.0, %v274_v59  ;;  %vm129_vm5 = vcmp.gt.f32.partialorder %v121_v22, 0.0  ;;  %v122_v27 = vadd.f32 %v114_v17, %v106_v23  ;;  %v107_v28 = vsub.f32 %v75_v21, %v99_v24 }
  0x45   :  { %144 = vst [vmem:[#allocation7 + $0x20] sm:$0xff] %v136_v26  ;;  %v137_v29 = vsel %vm129_vm5, 1.0, %v274_v59 }
  0x46   :  { %145 = vst [vmem:[#allocation7 + $0x28] sm:$0xff] %v137_v29  ;;  %vm130_vm6 = vcmp.gt.f32.partialorder %v122_v27, 0.0  ;;  %v123_v30 = vadd.f32 %v115_v25, %v107_v28 }
  0x47   :  { %v138_v31 = vsel %vm130_vm6, 1.0, %v274_v59 }
  0x48   :  { %146 = vst [vmem:[#allocation7 + $0x30] sm:$0xff] %v138_v31  ;;  %vm131_vm7 = vcmp.gt.f32.partialorder %v123_v30, 0.0 }
  0x49   :  { %v139_v32 = vsel %vm131_vm7, 1.0, %v274_v59 }
  0x4a   :  { %147 = vst [vmem:[#allocation7 + $0x38] sm:$0xff] %v139_v32 }
  0x4b   :  { %255 = shalt.err (!%p252_p6)
}
  0x4c   :  { %s256_s8 = scalar_lea.hbm %s329_s2, 1024 }
  0x4d   :  { %p257_p7 = scmp.ne.s32.totalorder %s329_s2, %s256_s8  ;;  %p260_p8 = scmp.lt.u32.totalorder %s256_s8, %s329_s2 }
  0x4f   :  { %p262_p9 = pnand %p260_p8, %p257_p7 }
  0x51   :  { %265 = shalt.err (!%p262_p9)
}
  0x52   :  { %157 = dma.vmem_to_hbm [thread:$0]  %s155_s4, 1024, %s329_s2, [#allocation4]  }
  0x53   :  { %270 = dma.done.wait [#allocation4], 1024  }
  0x54   :  { %271 = vsyncadd [#allocation4], 4294966272 }
  0x55   :  { %161 = vsyncpa [#allocation3], 1 }
  0x56   :  { %162 = vsyncpa [#allocation6], 1 }
  0x57   :  { %163 = vsyncpa [#allocation4], 1 }

</bundles_post_ra>
